<compile_context>
chip_gen: v7x
topology: tpu7x:2x2x1
jax: 0.10.0
libtpu: 0.0.40
codegen_flags: <defaults>
</compile_context>

<pallas_src>
import jax
import jax.numpy as jnp
from jax.experimental import pallas as pl
from jax.experimental.pallas import tpu as pltpu


# --------------------------------------------------------------------------- #
# Kernel
# --------------------------------------------------------------------------- #
def ffn_kernel(x_ref, w12_ref, b12_ref, w3_ref, b3_ref, o_ref, acc_ref):
    # x_ref   : (tm, E)        bf16   row tile (VMEM-resident across the F axis)
    # w12_ref : (1, E, 2*tf)   bf16   [w1_tile | w2_tile] for this F tile
    # b12_ref : (1, 1, 2*tf)   f32
    # w3_ref  : (1, tf, E)     bf16
    # b3_ref  : (1, E)         f32
    # o_ref   : (tm, E)        out_dtype (bf16 by default)
    # acc_ref : (tm, E)        f32 VMEM scratch, persists across the F axis
    j = pl.program_id(1)

    @pl.when(j == 0)
    def _():
        acc_ref[...] = jnp.zeros_like(acc_ref)

    tf = w3_ref.shape[1]

    # Fused up-projection: one MXU matmul covers linear1 + linear2 for this
    # F tile; f32 accumulation via preferred_element_type.
    up = jnp.dot(x_ref[...], w12_ref[0],
                 preferred_element_type=jnp.float32) + b12_ref[0, 0]   # (tm, 2*tf)
    a = up[:, :tf]
    b = up[:, tf:]
    gated = (a * jax.nn.sigmoid(a)) * b                                # SiLU gate, f32 VPU

    # Partial down-projection for this F tile, accumulated in f32.
    acc_ref[...] += jnp.dot(gated.astype(jnp.bfloat16), w3_ref[0],
                            preferred_element_type=jnp.float32)

    @pl.when(j == pl.num_programs(1) - 1)
    def _():
        o_ref[...] = (acc_ref[...] + b3_ref[...]).astype(o_ref.dtype)


# --------------------------------------------------------------------------- #
# Tiling / budget helpers
# --------------------------------------------------------------------------- #
def _hw_defaults():
    """Per-generation (tm, tf, vmem_capacity) defaults derived from VMEM size."""
    vmem_cap = 128 << 20
    try:
        vmem_cap = int(pltpu.get_tpu_info().vmem_capacity_bytes)
    except Exception:
        pass
    if vmem_cap <= (64 << 20):          # v7x: 64 MiB per TC -> smaller tf, big tm
        return 640, 256, vmem_cap
    return 512, 512, vmem_cap           # v5e / v6e: 128 MiB -> spend it on tm


def _pick_tm(M, target):
    """Largest divisor of M that is <= target and sublane-friendly for bf16."""
    gran = 16 if M % 16 == 0 else 8
    assert M % gran == 0, "flattened row count (batch*seq) must be a multiple of 8"
    tm = min(target, M)
    tm -= tm % gran
    tm = max(tm, gran)
    while M % tm:
        tm -= gran
    # Give the 'parallel' row axis >= 2 tiles when possible (v7x has 2 TCs/chip).
    if tm == M and (M // 2) >= gran and (M // 2) % gran == 0:
        tm = M // 2
    return tm


def _vmem_limit_bytes(tm, tf, E, out_bytes, vmem_cap):
    bf16 = 2
    est = (2 * tm * E * bf16            # x tile, double buffered
           + 2 * E * (2 * tf) * bf16    # w12 tile
           + 2 * (2 * tf) * 4           # b12
           + 2 * tf * E * bf16          # w3 tile
           + 2 * E * 4                  # b3
           + 2 * tm * E * out_bytes     # output tile
           + tm * E * 4)                # f32 accumulator scratch
    est = int(est * 1.25) + (2 << 20)   # ~25% headroom
    return max(min(est, int(vmem_cap * 0.9)), 32 << 20)


# --------------------------------------------------------------------------- #
# Parameter packing (do this ONCE at parameter-load time, not per call)
# --------------------------------------------------------------------------- #
def pack_ffn_params(w1, b1, w2, b2, w3, b3, *, tf):
    """Fuse (w1|w2), tile the hidden dim, cast weights to bf16."""
    E, F = w1.shape
    assert F % tf == 0 and tf % 128 == 0, "hidden dim / tf must be multiples of 128"
    assert E % 128 == 0, "in_dim must be a multiple of 128 (pad if needed)"
    nF = F // tf
    w12 = jnp.concatenate(
        [w1.reshape(E, nF, tf), w2.reshape(E, nF, tf)], axis=-1)        # (E, nF, 2tf)
    w12 = jnp.transpose(w12, (1, 0, 2)).astype(jnp.bfloat16)            # (nF, E, 2tf)
    b12 = jnp.concatenate(
        [b1.reshape(nF, 1, tf), b2.reshape(nF, 1, tf)], axis=-1
    ).astype(jnp.float32)                                                # (nF, 1, 2tf)
    w3t = w3.reshape(nF, tf, E).astype(jnp.bfloat16)                     # (nF, tf, E)
    b3r = b3.reshape(1, E).astype(jnp.float32)                           # (1, E)
    return w12, b12, w3t, b3r


# --------------------------------------------------------------------------- #
# Forward pass on pre-packed params
# --------------------------------------------------------------------------- #
def feed_forward_packed(x, w12, b12, w3t, b3r, *, tm=None,
                        out_dtype=jnp.bfloat16, vmem_limit_bytes=None):
    """y = (silu(x @ w1 + b1) * (x @ w2 + b2)) @ w3 + b3 on packed params."""
    nF, E, two_tf = w12.shape
    tf = two_tf // 2

    orig_shape = x.shape
    x2 = x.reshape(-1, E)
    M = x2.shape[0]

    tm_target, _, vmem_cap = _hw_defaults()
    tm = _pick_tm(M, tm if tm is not None else tm_target)
    nM = M // tm

    out_bytes = jnp.dtype(out_dtype).itemsize
    if vmem_limit_bytes is None:
        vmem_limit_bytes = _vmem_limit_bytes(tm, tf, E, out_bytes, vmem_cap)

    out = pl.pallas_call(
        ffn_kernel,
        out_shape=jax.ShapeDtypeStruct((M, E), out_dtype),
        grid_spec=pltpu.PrefetchScalarGridSpec(
            num_scalar_prefetch=0,
            grid=(nM, nF),
            in_specs=[
                pl.BlockSpec((tm, E), lambda i, j: (i, 0)),
                pl.BlockSpec((1, E, 2 * tf), lambda i, j: (j, 0, 0)),
                pl.BlockSpec((1, 1, 2 * tf), lambda i, j: (j, 0, 0)),
                pl.BlockSpec((1, tf, E), lambda i, j: (j, 0, 0)),
                pl.BlockSpec((1, E), lambda i, j: (0, 0)),
            ],
            out_specs=pl.BlockSpec((tm, E), lambda i, j: (i, 0)),
            scratch_shapes=[pltpu.VMEM((tm, E), jnp.float32)],
        ),
        compiler_params=pltpu.CompilerParams(
            dimension_semantics=("parallel", "arbitrary"),
            vmem_limit_bytes=vmem_limit_bytes),
    )(x2.astype(jnp.bfloat16), w12, b12, w3t, b3r)
    return out.reshape(orig_shape[:-1] + (E,))


def feed_forward(x, w1, b1, w2, b2, w3, b3, *, tm=None, tf=None,
                 out_dtype=jnp.bfloat16):
    """Convenience wrapper (packs weights per call).

    For repeated calls, pack once with pack_ffn_params() and call
    feed_forward_packed() to avoid re-streaming/transposing weights in HBM
    on every forward pass."""
    F = w1.shape[1]
    _, tf_target, _ = _hw_defaults()
    tf = min(tf if tf is not None else tf_target, F)
    packed = pack_ffn_params(w1, b1, w2, b2, w3, b3, tf=tf)
    return feed_forward_packed(x, *packed, tm=tm, out_dtype=out_dtype)


def feed_forward_ref(x, w1, b1, w2, b2, w3, b3):
    a = x @ w1 + b1
    b = x @ w2 + b2
    return (jax.nn.silu(a) * b) @ w3 + b3


# --------------------------------------------------------------------------- #
# Self-test
# --------------------------------------------------------------------------- #
if __name__ == "__main__":
    batch, seq = 2, 8
    in_dim, hidden_dim = 128, 256   # lane-dense small shapes (multiples of 128)

    key = jax.random.PRNGKey(0)
    k = jax.random.split(key, 7)
    x = jax.random.normal(k[0], (batch, seq, in_dim), jnp.float32)
    w1 = jax.random.normal(k[1], (in_dim, hidden_dim), jnp.float32) / jnp.sqrt(float(in_dim))
    b1 = jax.random.normal(k[2], (hidden_dim,), jnp.float32) * 0.02
    w2 = jax.random.normal(k[3], (in_dim, hidden_dim), jnp.float32) / jnp.sqrt(float(in_dim))
    b2 = jax.random.normal(k[4], (hidden_dim,), jnp.float32) * 0.02
    w3 = jax.random.normal(k[5], (hidden_dim, in_dim), jnp.float32) / jnp.sqrt(float(hidden_dim))
    b3 = jax.random.normal(k[6], (in_dim,), jnp.float32) * 0.02

    # Pack once (parameter-load time), tf=128 -> 2 hidden-dim tiles so the
    # accumulator init/finalize path over the "arbitrary" F axis is exercised.
    packed = pack_ffn_params(w1, b1, w2, b2, w3, b3, tf=128)

    out = feed_forward_packed(x, *packed)
    out = jax.block_until_ready(out)

    assert out.shape == (batch, seq, in_dim)
    assert out.dtype == jnp.bfloat16
    assert bool(jnp.all(jnp.isfinite(out.astype(jnp.float32))))

    ref = feed_forward_ref(x, w1, b1, w2, b2, w3, b3)
    diff = jnp.abs(out.astype(jnp.float32) - ref)
    rel_err = float(jnp.max(diff) / (jnp.max(jnp.abs(ref)) + 1e-6))
    # loose tol: bf16 MXU operands + bf16 output, f32 accumulation
    assert rel_err < 5e-2, f"rel_err={rel_err}"
    print("KERNEL_OK")
</pallas_src>

<mosaic_0001>
module attributes {stable_mosaic.version = 11 : i64} {
  func.func @ffn_kernel(%arg0: i32, %arg1: i32, %arg2: memref<16x128xbf16, #tpu.memory_space<vmem>>, %arg3: memref<1x128x256xbf16, #tpu.memory_space<vmem>>, %arg4: memref<1x1x256xf32, #tpu.memory_space<vmem>>, %arg5: memref<1x128x128xbf16, #tpu.memory_space<vmem>>, %arg6: memref<1x128xf32, #tpu.memory_space<vmem>>, %arg7: memref<16x128xbf16, #tpu.memory_space<vmem>>, %arg8: memref<16x128xf32, #tpu.memory_space<vmem>>) attributes {dimension_semantics = [#tpu.dimension_semantics<parallel>, #tpu.dimension_semantics<arbitrary>], iteration_bounds = array<i64: 1, 2>, scalar_prefetch = 0 : i64, scratch_operands = 1 : i64, tpu.core_type = #tpu.core_type<tc>, window_params = [{transform_indices = @transform_0, window_bounds = array<i64: 16, 128>}, {transform_indices = @transform_1, window_bounds = array<i64: 1, 128, 256>}, {transform_indices = @transform_2, window_bounds = array<i64: 1, 1, 256>}, {transform_indices = @transform_3, window_bounds = array<i64: 1, 128, 128>}, {pipeline_mode = #tpu.pipeline_mode<synchronous>, transform_indices = @transform_4, window_bounds = array<i64: 1, 128>}, {transform_indices = @transform_5, window_bounds = array<i64: 16, 128>}]} {
    %c0_i32 = arith.constant 0 : i32
    %0 = arith.cmpi eq, %arg1, %c0_i32 : i32
    %1 = arith.extui %0 : i1 to i32
    %c0_i32_0 = arith.constant 0 : i32
    %2 = arith.cmpi ne, %1, %c0_i32_0 : i32
    scf.if %2 {
      %cst_18 = arith.constant 0.000000e+00 : f32
      %31 = vector.broadcast %cst_18 : f32 to vector<16x128xf32>
      %c0_19 = arith.constant 0 : index
      %c0_20 = arith.constant 0 : index
      %32 = vector.load %arg8[%c0_19, %c0_20] : memref<16x128xf32, #tpu.memory_space<vmem>>, vector<16x128xf32>
      tpu.vector_store %arg8[%c0_19, %c0_20], %31 {strides = array<i32>} : memref<16x128xf32, #tpu.memory_space<vmem>>, vector<16x128xf32>,
    } else {
    }
    %c0 = arith.constant 0 : index
    %c0_1 = arith.constant 0 : index
    %3 = vector.load %arg2[%c0, %c0_1] : memref<16x128xbf16, #tpu.memory_space<vmem>>, vector<16x128xbf16>
    %c0_2 = arith.constant 0 : index
    %c0_3 = arith.constant 0 : index
    %c0_4 = arith.constant 0 : index
    %4 = vector.load %arg3[%c0_2, %c0_3, %c0_4] : memref<1x128x256xbf16, #tpu.memory_space<vmem>>, vector<1x128x256xbf16>
    %5 = vector.shape_cast %4 : vector<1x128x256xbf16> to vector<128x256xbf16>
    %cst = arith.constant dense<0.000000e+00> : vector<16x256xf32>
    %6 = tpu.matmul %3, %5, %cst {dimension_numbers = #tpu.dot_dimension_numbers<[1], [0], [0], [1], [0, 0, 1, 1], [], []>} : vector<16x128xbf16>, vector<128x256xbf16>, vector<16x256xf32> -> vector<16x256xf32>
    %c0_5 = arith.constant 0 : index
    %c0_6 = arith.constant 0 : index
    %c0_7 = arith.constant 0 : index
    %7 = vector.load %arg4[%c0_5, %c0_6, %c0_7] : memref<1x1x256xf32, #tpu.memory_space<vmem>>, vector<1x1x256xf32>
    %8 = vector.shape_cast %7 : vector<1x1x256xf32> to vector<256xf32>
    %9 = vector.shape_cast %8 : vector<256xf32> to vector<1x256xf32>
    %10 = vector.broadcast %9 : vector<1x256xf32> to vector<16x256xf32>
    %11 = arith.addf %6, %10 : vector<16x256xf32>
    %12 = vector.extract_strided_slice %11 {offsets = [0, 0], sizes = [16, 128], strides = [1, 1]} : vector<16x256xf32> to vector<16x128xf32>
    %13 = vector.extract_strided_slice %11 {offsets = [0, 128], sizes = [16, 128], strides = [1, 1]} : vector<16x256xf32> to vector<16x128xf32>
    %14 = arith.negf %12 : vector<16x128xf32>
    %15 = math.exp %14 : vector<16x128xf32>
    %cst_8 = arith.constant 1.000000e+00 : f32
    %16 = vector.broadcast %cst_8 : f32 to vector<16x128xf32>
    %17 = arith.addf %16, %15 : vector<16x128xf32>
    %18 = arith.divf %16, %17 : vector<16x128xf32>
    %19 = arith.mulf %12, %18 : vector<16x128xf32>
    %20 = arith.mulf %19, %13 : vector<16x128xf32>
    %c0_9 = arith.constant 0 : index
    %c0_10 = arith.constant 0 : index
    %21 = vector.load %arg8[%c0_9, %c0_10] : memref<16x128xf32, #tpu.memory_space<vmem>>, vector<16x128xf32>
    %22 = arith.truncf %20 : vector<16x128xf32> to vector<16x128xbf16>
    %c0_11 = arith.constant 0 : index
    %c0_12 = arith.constant 0 : index
    %c0_13 = arith.constant 0 : index
    %23 = vector.load %arg5[%c0_11, %c0_12, %c0_13] : memref<1x128x128xbf16, #tpu.memory_space<vmem>>, vector<1x128x128xbf16>
    %24 = vector.shape_cast %23 : vector<1x128x128xbf16> to vector<128x128xbf16>
    %cst_14 = arith.constant dense<0.000000e+00> : vector<16x128xf32>
    %25 = tpu.matmul %22, %24, %cst_14 {dimension_numbers = #tpu.dot_dimension_numbers<[1], [0], [0], [1], [0, 0, 1, 1], [], []>} : vector<16x128xbf16>, vector<128x128xbf16>, vector<16x128xf32> -> vector<16x128xf32>
    %26 = arith.addf %21, %25 : vector<16x128xf32>
    %c0_15 = arith.constant 0 : index
    %c0_16 = arith.constant 0 : index
    %27 = vector.load %arg8[%c0_15, %c0_16] : memref<16x128xf32, #tpu.memory_space<vmem>>, vector<16x128xf32>
    tpu.vector_store %arg8[%c0_15, %c0_16], %26 {strides = array<i32>} : memref<16x128xf32, #tpu.memory_space<vmem>>, vector<16x128xf32>,
    %c1_i32 = arith.constant 1 : i32
    %28 = arith.cmpi eq, %arg1, %c1_i32 : i32
    %29 = arith.extui %28 : i1 to i32
    %c0_i32_17 = arith.constant 0 : i32
    %30 = arith.cmpi ne, %29, %c0_i32_17 : i32
    scf.if %30 {
      %c0_18 = arith.constant 0 : index
      %c0_19 = arith.constant 0 : index
      %31 = vector.load %arg8[%c0_18, %c0_19] : memref<16x128xf32, #tpu.memory_space<vmem>>, vector<16x128xf32>
      %c0_20 = arith.constant 0 : index
      %c0_21 = arith.constant 0 : index
      %32 = vector.load %arg6[%c0_20, %c0_21] : memref<1x128xf32, #tpu.memory_space<vmem>>, vector<1x128xf32>
      %33 = vector.broadcast %32 : vector<1x128xf32> to vector<16x128xf32>
      %34 = arith.addf %31, %33 : vector<16x128xf32>
      %35 = arith.truncf %34 : vector<16x128xf32> to vector<16x128xbf16>
      %c0_22 = arith.constant 0 : index
      %c0_23 = arith.constant 0 : index
      %36 = vector.load %arg7[%c0_22, %c0_23] : memref<16x128xbf16, #tpu.memory_space<vmem>>, vector<16x128xbf16>
      tpu.vector_store %arg7[%c0_22, %c0_23], %35 {strides = array<i32>} : memref<16x128xbf16, #tpu.memory_space<vmem>>, vector<16x128xbf16>,
    } else {
    }
    return
  }
  func.func @transform_0(%arg0: i32, %arg1: i32) -> (i32, i32) {
    %c0_i32 = arith.constant 0 : i32
    %c0_i32_0 = arith.constant 0 : i32
    return %arg0, %c0_i32 : i32, i32
  }
  func.func @transform_1(%arg0: i32, %arg1: i32) -> (i32, i32, i32) {
    %c0_i32 = arith.constant 0 : i32
    %c0_i32_0 = arith.constant 0 : i32
    %c0_i32_1 = arith.constant 0 : i32
    return %arg1, %c0_i32, %c0_i32_0 : i32, i32, i32
  }
  func.func @transform_2(%arg0: i32, %arg1: i32) -> (i32, i32, i32) {
    %c0_i32 = arith.constant 0 : i32
    %c0_i32_0 = arith.constant 0 : i32
    %c0_i32_1 = arith.constant 0 : i32
    return %arg1, %c0_i32, %c0_i32_0 : i32, i32, i32
  }
  func.func @transform_3(%arg0: i32, %arg1: i32) -> (i32, i32, i32) {
    %c0_i32 = arith.constant 0 : i32
    %c0_i32_0 = arith.constant 0 : i32
    %c0_i32_1 = arith.constant 0 : i32
    return %arg1, %c0_i32, %c0_i32_0 : i32, i32, i32
  }
  func.func @transform_4(%arg0: i32, %arg1: i32) -> (i32, i32) {
    %c0_i32 = arith.constant 0 : i32
    %c0_i32_0 = arith.constant 0 : i32
    %c0_i32_1 = arith.constant 0 : i32
    return %c0_i32, %c0_i32_0 : i32, i32
  }
  func.func @transform_5(%arg0: i32, %arg1: i32) -> (i32, i32) {
    %c0_i32 = arith.constant 0 : i32
    %c0_i32_0 = arith.constant 0 : i32
    return %arg0, %c0_i32 : i32, i32
  }
}

</mosaic_0001>

<bundles_post_ra>
// kernel: tpu_custom_call.1
= control target key start
LH: loop header
LB: loop body
LE: loop exit
PB: predicated region body
PF: predicated region fallthrough
CT: control target
= control target key end

     0   :  { %s1464_s0 = inlined_call_operand.hbm [shape: bf16[16,128], index: 0, kind: input, shape index: {}]   ;;  %s1465_s1 = inlined_call_operand.hbm [shape: bf16[2,128,256], index: 1, kind: input, shape index: {}]   ;;  %s1466_s2 = inlined_call_operand.vmem [shape: f32[2,1,256], index: 2, kind: input, shape index: {}]   ;;  %s1467_s3 = inlined_call_operand.hbm [shape: bf16[2,128,128], index: 3, kind: input, shape index: {}]   ;;  %s1468_s4 = inlined_call_operand.vmem [shape: f32[1,128], index: 4, kind: input, shape index: {}]   ;;  %s1469_s5 = inlined_call_operand.hbm [shape: bf16[16,128], index: 5, kind: output, shape index: {}]  }
   0x1   :  { %1473 = sst [smem:[#allocation13_spill]] %s1465_s1 }
   0x2   :  { %10 = vsyncpa [#allocation4], 0 }
   0x3   :  { %11 = vsyncpa [#allocation7], 0 }
   0x4   :  { %13 = vsyncpa [#allocation7 + $0x1], 0 }
   0x5   :  { %14 = vsyncpa [#allocation5], 0  ;;  %s1201_s18 = smov 0   ;;  %s1203_s19 = smov 0  }
   0x6   :  { %s1205_s20 = smov 0   ;;  %s1207_s21 = smov 0  }
   0x7   :  { %s1209_s22 = smov 0   ;;  %s1211_s23 = smov 0  }
   0x8 LB: > { %s29_s24 = sadd.s32 1, %s1151_s22  ;;  %s65_s25 = sadd.s32 1, %s1143_s20  ;;  %s1155_s23 = sphi %s1211_s23, %s20_s23   ;;  %s1151_s22 = sphi %s1209_s22, %s1487_s22   ;;  %s1147_s21 = sphi %s1207_s21, %s1486_s21   ;;  %s1143_s20 = sphi %s1205_s20, %s1485_s20   ;;  %s1139_s19 = sphi %s1203_s19, %s1484_s19   ;;  %s1135_s18 = sphi %s1201_s18, %s1483_s18  }
   0x9   : > { %p30_p0 = scmp.ge.s32.totalorder %s29_s24, 2  ;;  %p72_p1 = scmp.ne.s32.totalorder %s1143_s20, %s1139_s19 }
   0xa   : > { %p73_p2 = scmp.eq.s32.totalorder %s1155_s23, 0  ;;  %p878_p4 = scmp.lt.s32.totalorder %s1155_s23, 2 }
   0xb   : > { %s1489_s24 = smov (%p30_p0, %s29_s24), 0  ;;  %s220_s27 = sand.u32 1, %s1155_s23  }
   0xc   : > { %p74_p3 = por %p73_p2, %p72_p1  ;;  %s62_s26 = ssub.s32 %s1151_s22, %s1489_s24 }
   0xd   : > { %p63_p5 = scmp.eq.s32.totalorder %s62_s26, 0  ;;  %s222_s28 = sand.u32 1, %s1143_s20  }
   0xe   : > { %s816_s29 = sshll.u32 %s1151_s22, 11  ;;  %s769_s6 = sshll.u32 %s222_s28, 7 }
   0xf   : > { %s1245_s30 = scalar_select %p63_p5, %s1143_s20, %s65_s25  }
  0x10   : > { %s1474_s1 = sld [smem:[#allocation13_spill]]  ;;  %p1252_p6 = pnand %p878_p4, %p74_p3 }
  0x11   : > { %s224_s11 = scalar_lea.vmem [#allocation6], %s769_s6  ;;  %s1258_s13 = sshll.u32 %s222_s28, 6 }
  0x12   : > { %s231_s12 = sshll.u32 %s224_s11, 4  ;;  %s1260_s14 = scalar_lea.sflag [#allocation7], %s220_s27  ;;  %s1256_s12 = int_to_ptr.vmem [resolvable:$true] %s231_s12 }
  0x13   : > { %p985_p8 = pneg %p1252_p6 }
  0x16   : > { %s1250_s9 = scalar_lea.hbm %s1474_s1, %s816_s29  ;;  %s988_s25 = scalar_lea.hbm %s1474_s1, 4096 }
  0x17   : > { %s983_s15 = scalar_lea.hbm %s1250_s9, 2048  ;;  %p989_p11 = scmp.lt.u32.totalorder %s1250_s9, %s1474_s1 }
  0x18   : > { %p984_p7 = scmp.ne.s32.totalorder %s1250_s9, %s983_s15  ;;  %p990_p12 = scmp.lt.u32.totalorder %s988_s25, %s983_s15 }
  0x19   : > { %p992_p0 = scmp.lt.u32.totalorder %s983_s15, %s1250_s9 }
  0x1a   : > { %p986_p9 = pnand %p985_p8, %p984_p7  ;;  %p991_p13 = por %p990_p12, %p989_p11 }
  0x1c   : > { %p987_p10 = pneg %p986_p9  ;;  %p993_p1 = por %p992_p0, %p991_p13 }
  0x1e   : > { %p994_p2 = pnand %p993_p1, %p987_p10 }
  0x20   : > { %997 = shalt.err (!%p994_p2)
}
  0x21   : > { %s998_s27 = scalar_lea.vmem %s1256_s12, 2048  ;;  %s1157_s28 = smov [#allocation6]  }
  0x22   : > { %p999_p3 = scmp.ne.s32.totalorder %s1256_s12, %s998_s27  ;;  %s1003_s6 = sshll.u32 %s1157_s28, 4  ;;  %s1004_s6 = int_to_ptr.vmem [resolvable:$false] %s1003_s6 }
  0x23   : > { %s1005_s7 = scalar_lea.vmem %s1004_s6, 4096  ;;  %p1006_p7 = scmp.lt.s32.totalorder %s1256_s12, %s1004_s6 }
  0x24   : > { %p1001_p4 = pnand %p999_p3, %p985_p8  ;;  %p1007_p9 = scmp.lt.s32.totalorder %s1005_s7, %s998_s27 }
  0x26   : > { %p1002_p5 = pneg %p1001_p4  ;;  %p1008_p11 = por %p1007_p9, %p1006_p7 }
  0x28   : > { %p1009_p12 = pnand %p1008_p11, %p1002_p5 }
  0x2a   : > { %1012 = shalt.err (!%p1009_p12)
}
  0x2b   : > { %s1158_s8 = smov 128   ;;  %s1159_s11 = smov 8  }
  0x2c   : > { %873 = dma.hbm_to_vmem [thread:$0]  (!%p1252_p6), %s1250_s9, 2048, %s1256_s12, %s1260_s14, %s1158_s8, %s1158_s8, %s1159_s11  }
  0x2d   : > { %s252_s15 = scalar_lea.vmem [#allocation8], %s1258_s13  ;;  %s1290_s17 = sadd.s32 4294967295, %s1155_s23  }
  0x2e   : > { %s259_s16 = sshll.u32 %s252_s15, 4  ;;  %p78_p10 = scmp.ne.s32.totalorder %s1139_s19, %s1135_s18  ;;  %s1312_s16 = int_to_ptr.vmem [resolvable:$true] %s259_s16 }
  0x2f   : > { %p1470_p13 = scmp.eq.s32.totalorder %s1290_s17, 0  ;;  %p766_p0 = scmp.ge.s32.totalorder %s1155_s23, 1 }
  0x30   : > { %p188_p1 = scmp.lt.s32.totalorder %s1155_s23, 3  ;;  %s1160_s9 = smov [#allocation3]  }
  0x31   : > { %p1299_p2 = por %p1470_p13, %p78_p10  ;;  %s203_s12 = sshll.u32 %s1160_s9, 4  ;;  %s1307_s12 = int_to_ptr.vmem [resolvable:$true] %s203_s12 }
  0x32   : > { %p1303_p3 = pnand %p766_p0, %p188_p1  ;;  %s817_s18 = sshll.u32 %s1151_s22, 10 }
  0x33   : > { %s1476_s25 = scalar_select %p1299_p2, 1, 0 }
  0x34   : > { %s1477_s26 = scalar_select %p1303_p3, 1, 0 }
  0x35   : > { %p866_p4 = pneg %p1303_p3  ;;  %s1323_s28 = scalar_lea.hbm %s1467_s3, %s817_s18 }
  0x36   : > { %s1013_s6 = scalar_lea.hbm %s1323_s28, 1024  ;;  %s1018_s11 = scalar_lea.hbm %s1467_s3, 2048 }
  0x37   : > { %p1316_p5 = pnand %p866_p4, %p1470_p13  ;;  %p1014_p7 = scmp.ne.s32.totalorder %s1323_s28, %s1013_s6 }
  0x38   : > { %p1019_p12 = scmp.lt.u32.totalorder %s1323_s28, %s1467_s3  ;;  %p1020_p10 = scmp.lt.u32.totalorder %s1018_s11, %s1013_s6 }
  0x39   : > { %p1016_p9 = pnand %p1014_p7, %p985_p8  ;;  %p1022_p1 = scmp.lt.u32.totalorder %s1013_s6, %s1323_s28 }
  0x3a   : > { %p1021_p0 = por %p1020_p10, %p1019_p12 }
  0x3b   : > { %p1017_p11 = pneg %p1016_p9 }
  0x3c   : > { %p1023_p4 = por %p1022_p1, %p1021_p0 }
  0x3e   : > { %p1024_p13 = pnand %p1023_p4, %p1017_p11 }
  0x40   : > { %1027 = shalt.err (!%p1024_p13)
}
  0x41   : > { %s1028_s18 = scalar_lea.vmem %s1312_s16, 1024  ;;  %s1161_s29 = smov [#allocation8]  }
  0x42   : > { %p1029_p7 = scmp.ne.s32.totalorder %s1312_s16, %s1028_s18  ;;  %s1033_s27 = sshll.u32 %s1161_s29, 4  ;;  %s1034_s27 = int_to_ptr.vmem [resolvable:$false] %s1033_s27 }
  0x43   : > { %s1035_s7 = scalar_lea.vmem %s1034_s27, 2048  ;;  %p1036_p3 = scmp.lt.s32.totalorder %s1312_s16, %s1034_s27 }
  0x44   : > { %p1031_p9 = pnand %p1029_p7, %p985_p8  ;;  %p1037_p12 = scmp.lt.s32.totalorder %s1035_s7, %s1028_s18 }
  0x46   : > { %p1032_p2 = pneg %p1031_p9  ;;  %p1038_p10 = por %p1037_p12, %p1036_p3 }
  0x48   : > { %p1039_p0 = pnand %p1038_p10, %p1032_p2 }
  0x4a   : > { %1042 = shalt.err (!%p1039_p0)
}
  0x4b   : > { %s1162_s6 = smov 64   ;;  %s1163_s8 = smov 4  }
  0x4c   : > { %876 = dma.hbm_to_vmem [thread:$0]  (!%p1252_p6), %s1323_s28, 1024, %s1312_s16, %s1260_s14, %s1162_s6, %s1162_s6, %s1163_s8  }
  0x4d   : > { %s1043_s9 = scalar_lea.hbm %s1464_s0, 128  ;;  %p1045_p13 = pneg %p1316_p5 }
  0x4e   : > { %p1044_p8 = scmp.ne.s32.totalorder %s1464_s0, %s1043_s9  ;;  %p1050_p11 = scmp.lt.u32.totalorder %s1043_s9, %s1464_s0 }
  0x50   : > { %p1046_p2 = pnand %p1045_p13, %p1044_p8 }
  0x52   : > { %p1047_p3 = pneg %p1046_p2 }
  0x54   : > { %p1052_p1 = pnand %p1050_p11, %p1047_p3 }
  0x56   : > { %1055 = shalt.err (!%p1052_p1)
}
  0x57   : > { %s1056_s10 = scalar_lea.vmem %s1307_s12, 128  ;;  %p1064_p9 = scmp.lt.s32.totalorder %s1307_s12, %s1307_s12 }
  0x58   : > { %p1057_p6 = scmp.ne.s32.totalorder %s1307_s12, %s1056_s10  ;;  %p1065_p12 = scmp.lt.s32.totalorder %s1056_s10, %s1056_s10 }
  0x5a   : > { %p1059_p4 = pnand %p1057_p6, %p1045_p13  ;;  %p1066_p10 = por %p1065_p12, %p1064_p9 }
  0x5c   : > { %p1060_p7 = pneg %p1059_p4 }
  0x5e   : > { %p1067_p0 = pnand %p1066_p10, %p1060_p7 }
  0x60   : > { %1070 = shalt.err (!%p1067_p0)
}
  0x61   : > { %869 = dma.hbm_to_vmem [thread:$0]  (!%p1316_p5), %s1464_s0, 128, %s1307_s12, [#allocation4], %s1162_s6, %s1162_s6, %s1163_s8  }
  0x62   : > { %p1479_p8 = scmp.ne.s32.totalorder %s1477_s26, 0 }
  0x63   : > { %p1480_p2 = scmp.eq.s32.totalorder (!%p1479_p8), %s1290_s17, 0 }
  0x64   : > { %271 = sbr.rel (%p1479_p8) target bundleno = 659 (0x293), region = 40 }
  0x6b   : > { %1122 = dma.done.wait (%p1480_p2), [#allocation4], 128   ;;  %p1481_p13 = pmov %p1480_p2 }
  0x6c   : > { %s277_s16 = sand.u32 1, %s1290_s17   ;;  %s279_s28 = sand.u32 1, %s1139_s19  }
  0x6d   : > { %1124 = vsyncadd (%p1481_p13), [#allocation4], 4294967168  ;;  %s777_s13 = sshll.u32 %s279_s28, 7  ;;  %s278_s7 = scalar_lea.sflag [#allocation7], %s277_s16 }
  0x6e   : > { %s1378_s11 = scalar_lea.vmem [#allocation6], %s777_s13  ;;  %p1482_p3 = scmp.ne.s32.totalorder %s1476_s25, 0 }
  0x70   : > { %1126 = dma.done.wait (%p1482_p3), %s278_s7, 3072  }
  0x71   : > { %1128 = vsyncadd (%p1482_p3), %s278_s7, 4294964224  ;;  %s778_s26 = sshll.u32 %s279_s28, 6  ;;  %p322_p5 = scmp.lt.s32.totalorder %s1147_s21, 1 }
  0x72   : > { %s1391_s29 = scalar_lea.vmem [#allocation8], %s778_s26  ;;  %p780_p11 = scmp.ne.s32.totalorder %s1147_s21, 0 }
  0x73   : > { %s323_s12 = scalar_select %p322_p5, %s1147_s21, 1 }
  0x74   : > { %331 = sbr.rel (%p780_p11) target bundleno = 123 (0x7b), region = 56  ;;  %v1164_v0 = vmov (!%p780_p11), 0.0  }
  0x75   : > { %s779_s6 = sshll.u32 %s323_s12, 1  ;;  %332 = vst [vmem:[#allocation2] sm:$0xff] (!%p780_p11), %v1164_v0  ;;  %333 = vst [vmem:[#allocation2 + $0x8] sm:$0xff] (!%p780_p11), %v1164_v0 }
  0x76   : > { %s1389_s9 = scalar_lea.vmem %s1466_s2, %s779_s6 }
  0x7b PF: > { %v942_v1 = vld [vmem:[%s1378_s11 + $0x4] ss:$8 sps:$4 sm:$0xff]   ;;  %v944_v2 = vld [vmem:[%s1378_s11] ss:$8 sps:$4 sm:$0xff]   ;;  %v1165_v3 = vmov 0   ;;  %v966_v18 = vld [vmem:[#allocation3] sm:$0xff]   ;;  %v354_v28 = vlaneseq }
  0x7c   : > { %482 = vmatprep.mubr.bf16.mxu0 %v1165_v3  ;;  %450 = vmatprep.subr.bf16.mxu0 %v942_v1  ;;  %v945_v4 = vld [vmem:[%s1378_s11 + $0x14] ss:$8 sps:$4 sm:$0xff]   ;;  %v947_v5 = vld [vmem:[%s1378_s11 + $0x10] ss:$8 sps:$4 sm:$0xff]   ;;  %v948_v6 = vld [vmem:[%s1378_s11 + $0x24] ss:$8 sps:$4 sm:$0xff]  }
  0x7d   : > { %451 = vmatpush1.bf16.msra.mxu0 %v944_v2  ;;  %v950_v7 = vld [vmem:[%s1378_s11 + $0x20] ss:$8 sps:$4 sm:$0xff]   ;;  %v951_v8 = vld [vmem:[%s1378_s11 + $0x34] ss:$8 sps:$4 sm:$0xff]   ;;  %v953_v9 = vld [vmem:[%s1378_s11 + $0x30] ss:$8 sps:$4 sm:$0xff]  }
  0x7e   : > { %452 = vmatprep.subr.bf16.mxu0 %v945_v4  ;;  %v954_v10 = vld [vmem:[%s1378_s11 + $0x44] ss:$8 sps:$4 sm:$0xff]   ;;  %v956_v11 = vld [vmem:[%s1378_s11 + $0x40] ss:$8 sps:$4 sm:$0xff]   ;;  %v957_v12 = vld [vmem:[%s1378_s11 + $0x54] ss:$8 sps:$4 sm:$0xff]  }
  0x7f   : > { %v959_v13 = vld [vmem:[%s1378_s11 + $0x50] ss:$8 sps:$4 sm:$0xff]   ;;  %v960_v14 = vld [vmem:[%s1378_s11 + $0x64] ss:$8 sps:$4 sm:$0xff]   ;;  %v962_v15 = vld [vmem:[%s1378_s11 + $0x60] ss:$8 sps:$4 sm:$0xff]  }
  0x80   : > { %v963_v16 = vld [vmem:[%s1378_s11 + $0x74] ss:$8 sps:$4 sm:$0xff]   ;;  %v965_v17 = vld [vmem:[%s1378_s11 + $0x70] ss:$8 sps:$4 sm:$0xff]   ;;  %v967_v19 = vld [vmem:[%s1391_s29] sm:$0xff]   ;;  %v1166_v20 = vmov 0.0  }
  0x81   : > { %453 = vmatpush1.bf16.msra.mxu0 %v947_v5  ;;  %834 = vmatprep.subr.bf16.mxu1 %v1166_v20  ;;  %v968_v21 = vld [vmem:[%s1391_s29 + $0x8] sm:$0xff]   ;;  %v969_v22 = vld [vmem:[%s1391_s29 + $0x10] sm:$0xff]   ;;  %v970_v23 = vld [vmem:[%s1391_s29 + $0x18] sm:$0xff]   ;;  %vm1167_vm0 = vmmov 0   ;;  %v355_v29 = vshrl.u32 %v354_v28, 7  ;;  %p808_p1 = scmp.ne.s32.totalorder %s1147_s21, 1 }
  0x82   : > { %454 = vmatprep.subr.bf16.mxu0 %v948_v6  ;;  %835 = vmatpush3.bf16.msra.mxu1 %v967_v19  ;;  %v971_v24 = vld [vmem:[%s1391_s29 + $0x20] sm:$0xff]   ;;  %v972_v25 = vld [vmem:[%s1391_s29 + $0x28] sm:$0xff]   ;;  %v973_v26 = vld [vmem:[%s1391_s29 + $0x30] sm:$0xff]  }
  0x83   : > { %836 = vmatprep.subr.bf16.mxu1 %v1166_v20  ;;  %v974_v27 = vld [vmem:[%s1391_s29 + $0x38] sm:$0xff]   ;;  %850 = vmatprep.mubr.msk.bf16.mxu1 %vm1167_vm0, %v1166_v20  ;;  %v356_v30 = vsub.s32 0, %v355_v29  ;;  %v352_v31 = vld [vmem:[%s1389_s9] sm:$0x3]  ;;  %v360_v45 = vsub.s32 1, %v355_v29  ;;  %v510_v58 = vld [vmem:[#allocation2 + $0x8] sm:$0xff] }
  0x84   : > { %v509_v56 = vld [vmem:[#allocation2] sm:$0xff] }
  0x85   : > { %455 = vmatpush1.bf16.msra.mxu0 %v950_v7  ;;  %v357_v32 = vrot.slane %v352_v31, %v356_v30  ;;  %v361_v46 = vrot.slane %v352_v31, %v360_v45  ;;  %v809_v2 = vld [vmem:[%s1468_s4] ss:$0 sm:$0xff] (!%p808_p1) }
  0x86   : > { %456 = vmatprep.subr.bf16.mxu0 %v951_v8  ;;  %837 = vmatpush3.bf16.msra.mxu1 %v968_v21 }
  0x87   : > { %838 = vmatprep.subr.bf16.mxu1 %v1166_v20 }
  0x89   : > { %457 = vmatpush1.bf16.msra.mxu0 %v953_v9 }
  0x8a   : > { %458 = vmatprep.subr.bf16.mxu0 %v954_v10  ;;  %839 = vmatpush3.bf16.msra.mxu1 %v969_v22 }
  0x8b   : > { %840 = vmatprep.subr.bf16.mxu1 %v1166_v20 }
  0x8d   : > { %459 = vmatpush1.bf16.msra.mxu0 %v956_v11 }
  0x8e   : > { %460 = vmatprep.subr.bf16.mxu0 %v957_v12  ;;  %841 = vmatpush3.bf16.msra.mxu1 %v970_v23 }
  0x8f   : > { %842 = vmatprep.subr.bf16.mxu1 %v1166_v20 }
  0x91   : > { %461 = vmatpush1.bf16.msra.mxu0 %v959_v13 }
  0x92   : > { %462 = vmatprep.subr.bf16.mxu0 %v960_v14  ;;  %843 = vmatpush3.bf16.msra.mxu1 %v971_v24 }
  0x93   : > { %844 = vmatprep.subr.bf16.mxu1 %v1166_v20 }
  0x95   : > { %463 = vmatpush1.bf16.msra.mxu0 %v962_v15 }
  0x96   : > { %464 = vmatprep.subr.bf16.mxu0 %v963_v16  ;;  %845 = vmatpush3.bf16.msra.mxu1 %v972_v25 }
  0x97   : > { %846 = vmatprep.subr.bf16.mxu1 %v1166_v20 }
  0x99   : > { %465 = vmatpush1.bf16.msra.mxu0 %v965_v17 }
  0x9a   : > { %847 = vmatpush3.bf16.msra.mxu1 %v973_v26 }
  0x9b   : > { %848 = vmatprep.subr.bf16.mxu1 %v1166_v20 }
  0x9c   : > { %483 = vmatmul.mubr.bf16.vlgmr.msra.gmra.mrb[0].mxu0 %v966_v18 }
  0x9e   : > { %849 = vmatpush3.bf16.msra.mxu1 %v974_v27 }
 0x16f   : > { %v484_v33 = vpop.f32.mrb[0].mxu0 }
 0x170   : > { %v485_v34 = vadd.f32 %v484_v33, %v357_v32  ;;  %v486_v35 = vpop.f32.mrb[1].mxu0 }
 0x171   : > { %v488_v36 = vpop.f32.mrb[2].mxu0  ;;  %v487_v49 = vadd.f32 %v486_v35, %v361_v46 }
 0x172   : > { %v798_v37 = vmul.f32 -1.442695, %v485_v34  ;;  %v489_v38 = vadd.f32 %v488_v36, %v357_v32  ;;  %v490_v39 = vpop.f32.mrb[3].mxu0 }
 0x173   : > { %v491_v53 = vadd.f32 %v490_v39, %v361_v46 }
 0x174   : > { %975 = vpow2.f32 %v798_v37  ;;  %v799_v40 = vmul.f32 -1.442695, %v489_v38 }
 0x176   : > { %977 = vpow2.f32 %v799_v40 }
 0x17e   : > { %v976_v41 = vpop.eup %975 }
 0x17f   : > { %v499_v42 = vadd.f32 1.0, %v976_v41 }
 0x180   : > { %v978_v43 = vpop.eup %977 }
 0x181   : > { %979 = vrcp.f32 %v499_v42  ;;  %v500_v44 = vadd.f32 1.0, %v978_v43 }
 0x183   : > { %981 = vrcp.f32 %v500_v44 }
 0x18b   : > { %v980_v47 = vpop.eup %979 }
 0x18c   : > { %v505_v48 = vmul.f32 %v980_v47, %v485_v34 }
 0x18d   : > { %v982_v50 = vpop.eup %981 }
 0x18e   : > { %v507_v51 = vmul.f32 %v505_v48, %v487_v49  ;;  %v506_v52 = vmul.f32 %v982_v50, %v489_v38 }
 0x190   : > { %v508_v54 = vmul.f32 %v506_v52, %v491_v53 }
 0x192   : > { %v511_v55 = vpack.c.bf16 %v508_v54, %v507_v51 }
 0x194   : > { %851 = vmatmul.mubr.bf16.vlgmr.msra.gmra.mrb[0].mxu1 %v511_v55 }
 0x266   : > { %624 = sbr.rel (%p808_p1) target bundleno = 633 (0x279), region = 60 }
 0x267   : > { %v610_v57 = vpop.f32.mrb[0].mxu1 }
 0x268   : > { %v617_v59 = vadd.f32 %v610_v57, %v509_v56  ;;  %v852_v60 = vpop.f32.mrb[1].mxu1 }
 0x269   : > { %v613_v61 = vpop.f32.mrb[2].mxu1 }
 0x26a   : > { %619 = vst [vmem:[#allocation2] sm:$0xff] %v617_v59  ;;  %v618_v62 = vadd.f32 %v613_v61, %v510_v58  ;;  %v853_v63 = vpop.f32.mrb[3].mxu1 }
 0x26c   : > { %620 = vst [vmem:[#allocation2 + $0x8] sm:$0xff] %v618_v62 }
 0x271   : > { %v625_v0 = vld [vmem:[#allocation2] sm:$0xff] }
 0x272   : > { %v634_v3 = vadd.f32 %v809_v2, %v625_v0 }
 0x273   : > { %v626_v1 = vld [vmem:[#allocation2 + $0x8] sm:$0xff] }
 0x274   : > { %v635_v4 = vadd.f32 %v809_v2, %v626_v1 }
 0x276   : > { %v823_v5 = vpack.c.bf16 %v635_v4, %v634_v3 }
 0x278   : > { %824 = vst [vmem:[#allocation9] sm:$0xff] %v823_v5  }
 0x279 PF: > { %p880_p6 = scmp.eq.s32.totalorder %s1290_s17, 1  ;;  %s1168_s27 = smov [#allocation9]  }
 0x27a   : > { %s655_s10 = sshll.u32 %s1168_s27, 4  ;;  %s656_s10 = int_to_ptr.vmem [resolvable:$true] %s655_s10 }
 0x27b   : > { %s1071_s1 = scalar_lea.vmem %s656_s10, 128  ;;  %p1078_p12 = scmp.lt.s32.totalorder %s656_s10, %s656_s10 }
 0x27c   : > { %p1072_p4 = scmp.ne.s32.totalorder %s656_s10, %s1071_s1  ;;  %p1079_p10 = scmp.lt.s32.totalorder %s1071_s1, %s1071_s1 }
 0x27e   : > { %p1073_p7 = pnand %p1072_p4, %p880_p6  ;;  %p1080_p0 = por %p1079_p10, %p1078_p12 }
 0x280   : > { %p1074_p9 = pneg %p1073_p7 }
 0x282   : > { %p1081_p8 = pnand %p1080_p0, %p1074_p9 }
 0x284   : > { %1084 = shalt.err (!%p1081_p8)
}
 0x285   : > { %s1085_s16 = scalar_lea.hbm %s1469_s5, 128 }
 0x286   : > { %p1086_p2 = scmp.ne.s32.totalorder %s1469_s5, %s1085_s16  ;;  %p1091_p5 = scmp.lt.u32.totalorder %s1085_s16, %s1469_s5 }
 0x288   : > { %p1087_p13 = pnand %p1086_p2, %p880_p6 }
 0x28a   : > { %p1088_p3 = pneg %p1087_p13 }
 0x28c   : > { %p1093_p11 = pnand %p1091_p5, %p1088_p3 }
 0x28e   : > { %1096 = shalt.err (!%p1093_p11)
}
 0x28f   : > { %s1169_s26 = smov 64   ;;  %s1170_s12 = smov 4  }
 0x290   : > { %863 = dma.vmem_to_hbm [thread:$0]  (%p880_p6), %s656_s10, 128, %s1469_s5, [#allocation5], %s1169_s26, %s1169_s26, %s1170_s12  }
 0x291   : > { %1130 = dma.done.wait (%p880_p6), [#allocation5], 128  }
 0x292   : > { %1132 = vsyncadd (%p880_p6), [#allocation5], 4294967168 }
 0x293 PF: > { %s20_s23 = sadd.s32 1, %s1155_s23   ;;  %s1483_s18 = smov %s1139_s19 }
 0x294   : > { %p17_p1 = scmp.ge.s32.totalorder %s20_s23, 4   ;;  %s1484_s19 = smov %s1143_s20 }
 0x295   : > { %s1485_s20 = smov %s1245_s30  ;;  %s1486_s21 = smov %s1151_s22 }
 0x296   : > { %s1487_s22 = smov %s1489_s24  ;;  %19 = sbr.rel (!%p17_p1) target bundleno = 8 (0x8), region = 106 }
 0x29d   :  { %671 = vsyncpa [#allocation4], 1 }
 0x29e   :  { %673 = vsyncpa [#allocation4 + $0x1], 1 }
 0x29f   :  { %674 = vsyncpa [#allocation7], 1 }
 0x2a0   :  { %676 = vsyncpa [#allocation7 + $0x1], 1 }
 0x2a1   :  { %677 = vsyncpa [#allocation5], 1 }
 0x2a2   :  { %679 = vsyncpa [#allocation5 + $0x1], 1 }

</bundles_post_ra>
